<compile_context>
chip_gen: v7x
topology: tpu7x:2x2x1
jax: 0.10.0
libtpu: 0.0.40
codegen_flags: <defaults>
</compile_context>

<pallas_src>
import jax
import jax.numpy as jnp
from jax.experimental import pallas as pl
from jax.experimental.pallas import tpu as pltpu


def _round_up(v, m):
    return ((v + m - 1) // m) * m


def _vmem_budget():
    """(per-buffer budget bytes, vmem_limit_bytes), scaled to this chip's VMEM."""
    cap = 64 << 20  # conservative default: v7x physical VMEM per TensorCore
    try:
        info = pltpu.get_tpu_info()
        cap = int(getattr(info, "vmem_capacity_bytes", cap))
    except Exception:
        pass
    if cap >= (128 << 20):          # v5e / v6e (128 MiB physical)
        return 24 << 20, 96 << 20
    return 12 << 20, 48 << 20       # v7x (64 MiB physical, 32 MiB scoped default)


def _phase1_tiles(N, Cin, HW, itemsize, budget):
    """Pick (cin_tile, hw_tile) for the (N, cin_tile, hw_tile) x block.

    hw_tile is a multiple of 128 (lane-dense, unmasked vld); cin_tile is the
    full Cin (Cin <= 128) or a multiple of 128, so both the input block's
    sublane dim and the (N, Cin) output block's lane dim stay aligned.  HW
    width is prioritised (kept >= 512 lanes whenever the budget allows), then
    Cin rows grow into the remaining budget.
    """
    hw_full = _round_up(HW, 128)
    elem_budget = max(budget // (N * itemsize), 128)

    min_cin = Cin if Cin <= 128 else 128
    hw_tile = min(hw_full, 4096)                      # cap; plenty for roofline
    while hw_tile > 128 and min_cin * hw_tile > elem_budget:
        hw_tile = max(128, ((hw_tile // 2) // 128) * 128)

    if Cin <= 128:
        cin_tile = Cin
    else:
        cin_tile = (elem_budget // hw_tile) // 128 * 128
        cin_tile = int(min(max(cin_tile, 128), _round_up(Cin, 128)))
    return int(cin_tile), int(hw_tile)


def _phase2_tiles(rows, HW, itemsize, budget):
    """(row_tile, out_tile) for the (rows, HW) broadcast output.

    Prefer out_tile == HW (fully contiguous, unmasked store rows) and tile the
    sublane/row dim; only tile HW if even an 8-row slab overflows the budget.
    """
    row_bytes = HW * itemsize
    if rows * row_bytes <= budget:
        return rows, HW
    row_tile = (budget // row_bytes) // 8 * 8
    if row_tile >= 8:
        return int(min(row_tile, rows)), HW
    row_tile = 8 if rows >= 8 else rows
    out_tile = (budget // (row_tile * itemsize)) // 128 * 128
    out_tile = int(min(max(out_tile, 128), _round_up(HW, 128)))
    return int(row_tile), out_tile


def _make_sum_kernel(HW, hw_tile, needs_mask):
    """Phase 1: running per-(N, cin_tile) sum over HW tiles.

    Per-step: only VPU vreg adds (static 128-lane slices of the tile) into a
    (N, cin_tile, 128) scratch; the single XLU cross-lane reduce happens once
    at finalize.  The iota/where mask is paid only on the partial last tile.
    """
    groups = hw_tile // 128

    def accumulate(acc_ref, x):
        partial = x[:, :, 0:128]
        for k in range(1, groups):                    # static, lane-aligned slices
            partial = partial + x[:, :, k * 128:(k + 1) * 128]
        acc_ref[...] += partial

    def kernel(x_ref, sum_ref, acc_ref):
        t = pl.program_id(1)
        n_t = pl.num_programs(1)

        @pl.when(t == 0)
        def _init():
            acc_ref[...] = jnp.zeros_like(acc_ref)

        if needs_mask:
            @pl.when(t < n_t - 1)
            def _full_tile():
                accumulate(acc_ref, x_ref[...].astype(jnp.float32))

            @pl.when(t == n_t - 1)
            def _partial_tile():
                x = x_ref[...].astype(jnp.float32)
                lane = jax.lax.broadcasted_iota(jnp.int32, x.shape, dimension=2)
                x = jnp.where(t * hw_tile + lane < HW, x, 0.0)
                accumulate(acc_ref, x)
        else:
            accumulate(acc_ref, x_ref[...].astype(jnp.float32))

        @pl.when(t == n_t - 1)
        def _finalize():
            sum_ref[...] = jnp.sum(acc_ref[...], axis=-1)

    return kernel


def _global_sum(x3, cin_tile, hw_tile, vmem_limit):
    """Streamed global sum over the HW axis: (N, Cin, HW) -> (N, Cin) f32."""
    N, Cin, HW = x3.shape
    n_cin = pl.cdiv(Cin, cin_tile)
    n_hw = pl.cdiv(HW, hw_tile)
    needs_mask = (HW % hw_tile) != 0
    itemsize = x3.dtype.itemsize

    return pl.pallas_call(
        _make_sum_kernel(HW, hw_tile, needs_mask),
        out_shape=jax.ShapeDtypeStruct((N, Cin), jnp.float32),
        grid_spec=pltpu.PrefetchScalarGridSpec(
            num_scalar_prefetch=0,
            grid=(n_cin, n_hw),
            in_specs=[pl.BlockSpec((N, cin_tile, hw_tile),
                                   lambda c, t: (0, c, t))],
            out_specs=pl.BlockSpec((N, cin_tile), lambda c, t: (0, c)),
            scratch_shapes=[pltpu.VMEM((N, cin_tile, 128), jnp.float32)],
        ),
        compiler_params=pltpu.CompilerParams(
            dimension_semantics=("parallel", "arbitrary"),
            vmem_limit_bytes=vmem_limit),
        cost_estimate=pl.CostEstimate(
            flops=int(N * Cin * HW),
            transcendentals=0,
            bytes_accessed=int(x3.size * itemsize + N * Cin * 4)),
    )(x3)


def _broadcast_kernel(y_ref, o_ref):
    """Phase 2: per-row lane splat (row_tile, 1) -> (row_tile, out_tile)."""
    o_ref[...] = jnp.broadcast_to(y_ref[...], o_ref.shape).astype(o_ref.dtype)


def _broadcast_hw(y2, HW, out_dtype, row_tile, out_tile, vmem_limit):
    rows = y2.shape[0]
    n_rows = pl.cdiv(rows, row_tile)
    n_hw = pl.cdiv(HW, out_tile)
    itemsize = jnp.dtype(out_dtype).itemsize
    return pl.pallas_call(
        _broadcast_kernel,
        out_shape=jax.ShapeDtypeStruct((rows, HW), out_dtype),
        grid_spec=pltpu.PrefetchScalarGridSpec(
            num_scalar_prefetch=0,
            grid=(n_rows, n_hw),
            in_specs=[pl.BlockSpec((row_tile, 1), lambda r, h: (r, 0))],
            out_specs=pl.BlockSpec((row_tile, out_tile), lambda r, h: (r, h)),
        ),
        compiler_params=pltpu.CompilerParams(
            dimension_semantics=("parallel", "parallel"),
            vmem_limit_bytes=vmem_limit),
        cost_estimate=pl.CostEstimate(
            flops=0,
            transcendentals=0,
            bytes_accessed=int(rows * HW * itemsize + rows * itemsize)),
    )(y2)


def aspp_pooling(x, conv_w, bn_gamma, bn_beta, bn_mean, bn_var, eps=1e-5):
    """x: (N, Cin, H, W) NCHW as in PyTorch. Returns (N, Cout, H, W)."""
    N, Cin, H, W = x.shape
    Cout = conv_w.shape[0]
    HW = H * W
    itemsize = x.dtype.itemsize
    budget, vmem_limit = _vmem_budget()

    # ---------------- Phase 1: streamed global sum over H*W -----------------
    x3 = x.reshape(N, Cin, HW)
    cin_tile, hw_tile = _phase1_tiles(N, Cin, HW, itemsize, budget)
    sums = _global_sum(x3, cin_tile, hw_tile, vmem_limit)          # (N, Cin) f32

    # ---- Tiny 1x1 conv + BN + ReLU on the pooled vector (plain jnp; kept out
    # of the kernel so Phase 1's Cin axis stays parallel across TensorCores).
    # BN scale and 1/HW are folded into the conv weight:
    #   relu((sum/HW) @ W^T * s + b) == relu(sum @ (W^T * s / HW) + b)
    scale = bn_gamma / jnp.sqrt(bn_var + eps)                       # (Cout,)
    w_folded = (conv_w.reshape(Cout, Cin).astype(jnp.float32).T
                * (scale / HW)[None, :])                            # (Cin, Cout)
    bias = bn_beta - bn_mean * scale                                # (Cout,)
    y = jnp.maximum(sums @ w_folded + bias[None, :], 0.0)           # (N, Cout) f32

    # ---------------- Phase 2: exact 1x1 bilinear upsample == broadcast -----
    # TODO(synk): if the downstream ASPP concat can consume the (N, Cout, 1, 1)
    # pooled vector directly (or fuse this splat into its own kernel), skip
    # this full N*Cout*HW HBM round trip entirely.
    y2 = y.astype(x.dtype).reshape(N * Cout, 1)                     # sublane-major
    row_tile, out_tile = _phase2_tiles(N * Cout, HW, itemsize, budget)
    out = _broadcast_hw(y2, HW, x.dtype, row_tile, out_tile, vmem_limit)
    return out.reshape(N, Cout, H, W)


if __name__ == "__main__":
    # Small, deterministic synthetic setup (matches the module's __init__ shapes).
    N, Cin, Cout, H, W = 2, 4, 4, 16, 16

    key = jax.random.PRNGKey(0)
    kx, kw, kg, kb, km, kv = jax.random.split(key, 6)

    x = jax.random.normal(kx, (N, Cin, H, W), dtype=jnp.float32)

    # Conv2d(in_channels, out_channels, 1, bias=False) -> weight (Cout, Cin, 1, 1)
    conv_w = jax.random.normal(kw, (Cout, Cin, 1, 1), dtype=jnp.float32) * 0.1
    # BatchNorm2d(out_channels) parameters / running stats (inference mode).
    bn_gamma = 1.0 + 0.1 * jax.random.normal(kg, (Cout,), dtype=jnp.float32)
    bn_beta = 0.1 * jax.random.normal(kb, (Cout,), dtype=jnp.float32)
    bn_mean = 0.05 * jax.random.normal(km, (Cout,), dtype=jnp.float32)
    bn_var = jnp.abs(1.0 + 0.1 * jax.random.normal(kv, (Cout,), dtype=jnp.float32))

    out = aspp_pooling(x, conv_w, bn_gamma, bn_beta, bn_mean, bn_var)
    jax.block_until_ready(out)

    # Pure-JAX reference of the same semantics.
    pool = jnp.mean(x, axis=(2, 3))                                 # (N, Cin)
    y_ref = pool @ conv_w.reshape(Cout, Cin).T                      # (N, Cout)
    s_ref = bn_gamma / jnp.sqrt(bn_var + 1e-5)
    y_ref = y_ref * s_ref + (bn_beta - bn_mean * s_ref)
    y_ref = jnp.maximum(y_ref, 0.0)
    ref = jnp.broadcast_to(y_ref[:, :, None, None], (N, Cout, H, W))
    assert jnp.allclose(out, ref, atol=1e-5, rtol=1e-5)

    print("KERNEL_OK")
</pallas_src>

<mosaic_0001>
module attributes {stable_mosaic.version = 11 : i64} {
  func.func @kernel(%arg0: i32, %arg1: i32, %arg2: memref<2x4x256xf32, #tpu.memory_space<vmem>>, %arg3: memref<2x4xf32, #tpu.memory_space<vmem>>, %arg4: memref<2x4x128xf32, #tpu.memory_space<vmem>>) attributes {dimension_semantics = [#tpu.dimension_semantics<parallel>, #tpu.dimension_semantics<arbitrary>], iteration_bounds = array<i64: 1, 1>, scalar_prefetch = 0 : i64, scratch_operands = 1 : i64, tpu.core_type = #tpu.core_type<tc>, window_params = [{transform_indices = @transform_0, window_bounds = array<i64: 2, 4, 256>}, {transform_indices = @transform_1, window_bounds = array<i64: 2, 4>}]} {
    %c0_i32 = arith.constant 0 : i32
    %0 = arith.cmpi eq, %arg1, %c0_i32 : i32
    %1 = arith.extui %0 : i1 to i32
    %c0_i32_0 = arith.constant 0 : i32
    %2 = arith.cmpi ne, %1, %c0_i32_0 : i32
    scf.if %2 {
      %cst = arith.constant 0.000000e+00 : f32
      %13 = vector.broadcast %cst : f32 to vector<2x4x128xf32>
      %c0_11 = arith.constant 0 : index
      %c0_12 = arith.constant 0 : index
      %c0_13 = arith.constant 0 : index
      %14 = vector.load %arg4[%c0_11, %c0_12, %c0_13] : memref<2x4x128xf32, #tpu.memory_space<vmem>>, vector<2x4x128xf32>
      tpu.vector_store %arg4[%c0_11, %c0_12, %c0_13], %13 {strides = array<i32>} : memref<2x4x128xf32, #tpu.memory_space<vmem>>, vector<2x4x128xf32>,
    } else {
    }
    %c0 = arith.constant 0 : index
    %c0_1 = arith.constant 0 : index
    %c0_2 = arith.constant 0 : index
    %3 = vector.load %arg2[%c0, %c0_1, %c0_2] : memref<2x4x256xf32, #tpu.memory_space<vmem>>, vector<2x4x256xf32>
    %4 = vector.extract_strided_slice %3 {offsets = [0, 0, 0], sizes = [2, 4, 128], strides = [1, 1, 1]} : vector<2x4x256xf32> to vector<2x4x128xf32>
    %5 = vector.extract_strided_slice %3 {offsets = [0, 0, 128], sizes = [2, 4, 128], strides = [1, 1, 1]} : vector<2x4x256xf32> to vector<2x4x128xf32>
    %6 = arith.addf %4, %5 : vector<2x4x128xf32>
    %c0_3 = arith.constant 0 : index
    %c0_4 = arith.constant 0 : index
    %c0_5 = arith.constant 0 : index
    %7 = vector.load %arg4[%c0_3, %c0_4, %c0_5] : memref<2x4x128xf32, #tpu.memory_space<vmem>>, vector<2x4x128xf32>
    %8 = arith.addf %7, %6 : vector<2x4x128xf32>
    %c0_6 = arith.constant 0 : index
    %c0_7 = arith.constant 0 : index
    %c0_8 = arith.constant 0 : index
    %9 = vector.load %arg4[%c0_6, %c0_7, %c0_8] : memref<2x4x128xf32, #tpu.memory_space<vmem>>, vector<2x4x128xf32>
    tpu.vector_store %arg4[%c0_6, %c0_7, %c0_8], %8 {strides = array<i32>} : memref<2x4x128xf32, #tpu.memory_space<vmem>>, vector<2x4x128xf32>,
    %c0_i32_9 = arith.constant 0 : i32
    %10 = arith.cmpi eq, %arg1, %c0_i32_9 : i32
    %11 = arith.extui %10 : i1 to i32
    %c0_i32_10 = arith.constant 0 : i32
    %12 = arith.cmpi ne, %11, %c0_i32_10 : i32
    scf.if %12 {
      %c0_11 = arith.constant 0 : index
      %c0_12 = arith.constant 0 : index
      %c0_13 = arith.constant 0 : index
      %13 = vector.load %arg4[%c0_11, %c0_12, %c0_13] : memref<2x4x128xf32, #tpu.memory_space<vmem>>, vector<2x4x128xf32>
      %cst = arith.constant dense<0.000000e+00> : vector<2x4xf32>
      %14 = vector.multi_reduction <add>, %13, %cst [2] : vector<2x4x128xf32> to vector<2x4xf32>
      %c0_14 = arith.constant 0 : index
      %c0_15 = arith.constant 0 : index
      %15 = vector.load %arg3[%c0_14, %c0_15] : memref<2x4xf32, #tpu.memory_space<vmem>>, vector<2x4xf32>
      tpu.vector_store %arg3[%c0_14, %c0_15], %14 {strides = array<i32>} : memref<2x4xf32, #tpu.memory_space<vmem>>, vector<2x4xf32>,
    } else {
    }
    return
  }
  func.func @transform_0(%arg0: i32, %arg1: i32) -> (i32, i32, i32) {
    %c0_i32 = arith.constant 0 : i32
    %c0_i32_0 = arith.constant 0 : i32
    return %c0_i32, %arg0, %arg1 : i32, i32, i32
  }
  func.func @transform_1(%arg0: i32, %arg1: i32) -> (i32, i32) {
    %c0_i32 = arith.constant 0 : i32
    %c0_i32_0 = arith.constant 0 : i32
    return %c0_i32, %arg0 : i32, i32
  }
}

</mosaic_0001>

<bundles_post_ra>
// kernel: tpu_custom_call.1
= control target key start
LH: loop header
LB: loop body
LE: loop exit
PB: predicated region body
PF: predicated region fallthrough
CT: control target
= control target key end

     0   :  { %6 = vsyncpa [#allocation4], 0  ;;  %s181_s0 = inlined_call_operand.hbm [shape: f32[2,4,256], index: 0, kind: input, shape index: {}]   ;;  %s182_s1 = inlined_call_operand.hbm [shape: f32[2,4], index: 1, kind: output, shape index: {}]  }
   0x1   :  { %7 = vsyncpa [#allocation5], 0  ;;  %s142_s6 = smov [#allocation3]   ;;  %s94_s10 = scalar_lea.hbm %s181_s0, 256 }
   0x2   :  { %s13_s7 = sshll.u32 %s142_s6, 4  ;;  %p95_p0 = scmp.ne.s32.totalorder %s181_s0, %s94_s10  ;;  %s14_s7 = int_to_ptr.vmem [resolvable:$true] %s13_s7 }
   0x3   :  { %p98_p1 = scmp.lt.u32.totalorder %s94_s10, %s181_s0 }
   0x5   :  { %p100_p2 = pnand %p98_p1, %p95_p0 }
   0x7   :  { %103 = shalt.err (!%p100_p2)
}
   0x8   :  { %s104_s15 = scalar_lea.vmem %s14_s7, 256  ;;  %p109_p4 = scmp.lt.s32.totalorder %s14_s7, %s14_s7 }
   0x9   :  { %p105_p3 = scmp.ne.s32.totalorder %s14_s7, %s104_s15  ;;  %p110_p5 = scmp.lt.s32.totalorder %s104_s15, %s104_s15 }
   0xb   :  { %p111_p6 = por %p110_p5, %p109_p4 }
   0xd   :  { %p112_p7 = pnand %p111_p6, %p105_p3 }
   0xf   :  { %115 = shalt.err (!%p112_p7)
}
  0x10   :  { %s143_s16 = smov 128   ;;  %s144_s17 = smov 8  }
  0x11   :  { %19 = dma.hbm_to_vmem [thread:$0]  %s181_s0, 256, %s14_s7, [#allocation4], %s143_s16, %s143_s16, %s144_s17  }
  0x12   :  { %138 = dma.done.wait [#allocation4], 256  }
  0x13   :  { %139 = vsyncadd [#allocation4], 4294967040  ;;  %v145_v0 = vmov 0.0   ;;  %v29_v1 = vld [vmem:[#allocation3] sm:$0xff]  ;;  %v30_v2 = vld [vmem:[#allocation3 + $0x8] sm:$0xff]  ;;  %vm50_vm0 = vcmask 1043456   ;;  %v59_v15 = vlaneseq }
  0x14   :  { %27 = vst [vmem:[#allocation2] sm:$0xf] %v145_v0  ;;  %28 = vst [vmem:[#allocation2 + $0x4] sm:$0xf] %v145_v0  ;;  %v33_v3 = vrot.slane %v29_v1, 4  ;;  %v34_v4 = vrot.slane %v30_v2, 4 }
  0x15   :  { %v60_v16 = vand.u32 127, %v59_v15  ;;  %v62_v17 = vshrl.u32 %v59_v15, 7  ;;  %s146_s0 = smov [#allocation6]   ;;  %vm69_vm1 = vcmask 1041409   ;;  %vm72_vm2 = vcmask 25600  }
  0x16   :  { %v37_v7 = vadd.f32 %v33_v3, %v29_v1  ;;  %v38_v8 = vadd.f32 %v34_v4, %v30_v2  ;;  %s80_s20 = sshll.u32 %s146_s0, 4  ;;  %s81_s20 = int_to_ptr.vmem [resolvable:$true] %s80_s20 }
  0x17   :  { %v63_v19 = vsub.s32 %v60_v16, %v62_v17  ;;  %s116_s21 = scalar_lea.vmem %s81_s20, 32  ;;  %p121_p9 = scmp.lt.s32.totalorder %s81_s20, %s81_s20 }
  0x18   :  { %p117_p8 = scmp.ne.s32.totalorder %s81_s20, %s116_s21  ;;  %p122_p10 = scmp.lt.s32.totalorder %s116_s21, %s116_s21 }
  0x1a   :  { %p123_p11 = por %p122_p10, %p121_p9 }
  0x1b   :  { %v39_v5 = vld [vmem:[#allocation2] sm:$0xf]  ;;  %v40_v6 = vld [vmem:[#allocation2 + $0x4] sm:$0xf] }
  0x1c   :  { %v41_v9 = vadd.f32 %v39_v5, %v37_v7  ;;  %v42_v10 = vadd.f32 %v40_v6, %v38_v8  ;;  %p124_p12 = pnand %p123_p11, %p117_p8 }
  0x1e   :  { %43 = vst [vmem:[#allocation2] sm:$0xf] %v41_v9  ;;  %44 = vst [vmem:[#allocation2 + $0x4] sm:$0xf] %v42_v10 }
  0x25   :  { %v48_v11 = vld [vmem:[#allocation2] sm:$0xf]  ;;  %v49_v12 = vld [vmem:[#allocation2 + $0x4] sm:$0xf] }
  0x26   :  { %v51_v13 = vsel %vm50_vm0, %v48_v11, 0.0  ;;  %v54_v14 = vsel %vm50_vm0, %v49_v12, 0.0 }
  0x27   :  { %52 = vadd.xlane.f32.xlu0 %v51_v13 }
  0x2b   :  { %55 = vadd.xlane.f32.xlu0 %v54_v14 }
  0xb4   :  { %v53_v18 = vpop.xlane.xlu0 %52 }
  0xb5   :  { %v64_v21 = vrot.slane %v53_v18, %v63_v19 }
  0xb8   :  { %v56_v20 = vpop.xlane.xlu0 %55 }
  0xb9   :  { %v68_v22 = vrot.slane %v56_v20, %v63_v19 }
  0xbb   :  { %v70_v23 = vsel %vm69_vm1, %v68_v22, %v64_v21 }
  0xbc   :  { %73 = vst.msk [vmem:[#allocation6] sm:$0x3] %vm72_vm2, %v70_v23 }
  0xbd   :  { %127 = shalt.err (!%p124_p12)
}
  0xbe   :  { %s128_s24 = scalar_lea.hbm %s182_s1, 32 }
  0xbf   :  { %p129_p13 = scmp.ne.s32.totalorder %s182_s1, %s128_s24  ;;  %p132_p0 = scmp.lt.u32.totalorder %s128_s24, %s182_s1 }
  0xc1   :  { %p134_p1 = pnand %p132_p0, %p129_p13 }
  0xc3   :  { %137 = shalt.err (!%p134_p1)
}
  0xc4   :  { %83 = dma.vmem_to_hbm [thread:$0]  %s81_s20, 32, %s182_s1, [#allocation5]  }
  0xc5   :  { %140 = dma.done.wait [#allocation5], 32  }
  0xc6   :  { %141 = vsyncadd [#allocation5], 4294967264 }
  0xc7   :  { %87 = vsyncpa [#allocation4], 1 }
  0xc8   :  { %88 = vsyncpa [#allocation5], 1 }

</bundles_post_ra>
